<compile_context>
chip_gen: v6e
topology: v6e:2x2x1
jax: 0.10.0
libtpu: 0.0.40
codegen_flags: <defaults>
</compile_context>

<pallas_src>
import jax
import jax.numpy as jnp
from jax.experimental import pallas as pl
from jax.experimental.pallas import tpu as pltpu

LANES = 128


def _round_up(n, m):
    return -(-n // m) * m


def _cdiv(a, b):
    return -(-a // b)


def mlp_kernel(x_ref, w1_ref, b1_ref, w2_ref, b2_ref, w3_ref, b3_ref, o_ref):
    x = x_ref[...]                       # (tile_m, n_states) f32, n_states tiny (e.g. 4)
    n_states = x.shape[1]
    n_actions = o_ref.shape[1]           # narrow real output width

    # ---- Layer 1: K is tiny -> skip the MXU, do K broadcast FMAs on the VPU ----
    acc = x[:, 0:1] * w1_ref[pl.ds(0, 1), :]          # (tile_m, 1) * (1, H1p)
    for k in range(1, n_states):                      # static unroll (n_states small)
        acc = acc + x[:, k:k + 1] * w1_ref[pl.ds(k, 1), :]
    h1 = jnp.maximum(acc + b1_ref[...], 0.0)          # (tile_m, H1p) f32

    # ---- Layers 2 & 3: lane-dense bf16 MXU matmuls with f32 accumulation ----
    h2 = jnp.dot(h1.astype(jnp.bfloat16), w2_ref[...],
                 preferred_element_type=jnp.float32) + b2_ref[...]
    h2 = jnp.maximum(h2, 0.0)
    out = jnp.dot(h2.astype(jnp.bfloat16), w3_ref[...],
                  preferred_element_type=jnp.float32) + b3_ref[...]

    # ---- Narrow store: only the real action lanes ever hit HBM ----
    o_ref[...] = out[:, :n_actions].astype(o_ref.dtype)


def init_params(key, n_states, n_actions):
    """Torch-like nn.Linear init: uniform(-1/sqrt(fan_in), 1/sqrt(fan_in)).
    Weights stored as (in_features, out_features) so y = x @ W + b."""
    dims = [(n_states, 100), (100, 50), (50, n_actions)]
    params = []
    for fan_in, fan_out in dims:
        key, kw, kb = jax.random.split(key, 3)
        bound = 1.0 / jnp.sqrt(jnp.float32(fan_in))
        w = jax.random.uniform(kw, (fan_in, fan_out), jnp.float32, -bound, bound)
        b = jax.random.uniform(kb, (1, fan_out), jnp.float32, -bound, bound)
        params += [w, b]
    return tuple(params)


def pad_params(params):
    """Zero-pad feature dims to multiples of 128 lanes (exact zeros so ReLU(0)=0
    keeps padded lanes inert).  w2/w3 are stored bf16 for native-rate MXU matmuls;
    w1/biases stay f32 (layer 1 runs on the VPU, biases add to the f32 accumulator)."""
    w1, b1, w2, b2, w3, b3 = params
    h1p = _round_up(w1.shape[1], LANES)
    h2p = _round_up(w2.shape[1], LANES)
    outp = _round_up(w3.shape[1], LANES)

    w1p = jnp.zeros((w1.shape[0], h1p), jnp.float32).at[:, : w1.shape[1]].set(w1)
    b1p = jnp.zeros((1, h1p), jnp.float32).at[:, : b1.shape[1]].set(b1)
    w2p = jnp.zeros((h1p, h2p), jnp.float32).at[: w2.shape[0], : w2.shape[1]].set(w2)
    b2p = jnp.zeros((1, h2p), jnp.float32).at[:, : b2.shape[1]].set(b2)
    w3p = jnp.zeros((h2p, outp), jnp.float32).at[: w3.shape[0], : w3.shape[1]].set(w3)
    b3p = jnp.zeros((1, outp), jnp.float32).at[:, : b3.shape[1]].set(b3)
    return (w1p, b1p, w2p.astype(jnp.bfloat16), b2p,
            w3p.astype(jnp.bfloat16), b3p)


def _choose_tiling(batch, tm_max):
    """Pick (tile_m, padded_batch): big tiles to amortise the ~0.35us per-step
    pipeline cost, but keep >=2 (and even) grid steps when there is enough work
    so the parallel batch axis shards across v7x's two TensorCores."""
    rows = _round_up(max(batch, 1), 8)
    n_steps = _cdiv(rows, tm_max)
    if n_steps == 1 and rows >= 16:
        n_steps = 2                       # give both TCs a shard
    elif n_steps > 1 and n_steps % 2 == 1:
        n_steps += 1                      # even step count splits cleanly over 2 TCs
    tile_m = _round_up(_cdiv(rows, n_steps), 8)
    return tile_m, tile_m * n_steps


def net_forward(x, padded_params, n_actions, *, tm=2048):
    w1, b1, w2, b2, w3, b3 = padded_params
    batch, n_states = x.shape

    tile_m, padded_batch = _choose_tiling(batch, tm)
    if padded_batch != batch:
        x = jnp.pad(x, ((0, padded_batch - batch), (0, 0)))

    def whole(a):  # weights / biases: whole-array block, resident across grid steps
        nd = a.ndim
        return pl.BlockSpec(a.shape, lambda i: (0,) * nd)

    out = pl.pallas_call(
        mlp_kernel,
        out_shape=jax.ShapeDtypeStruct((padded_batch, n_actions), jnp.float32),
        grid=(padded_batch // tile_m,),
        in_specs=[
            pl.BlockSpec((tile_m, n_states), lambda i: (i, 0)),
            whole(w1), whole(b1), whole(w2), whole(b2), whole(w3), whole(b3),
        ],
        out_specs=pl.BlockSpec((tile_m, n_actions), lambda i: (i, 0)),
        compiler_params=pltpu.CompilerParams(
            dimension_semantics=("parallel",),       # shard batch tiles over TCs
            vmem_limit_bytes=32 * 1024 * 1024,        # safe on v7x's 64 MiB VMEM
        ),
    )(x, w1, b1, w2, b2, w3, b3)
    return out[:batch] if padded_batch != batch else out


def reference_forward(x, params):
    w1, b1, w2, b2, w3, b3 = params
    h1 = jnp.maximum(x @ w1 + b1, 0.0)
    h2 = jnp.maximum(h1 @ w2 + b2, 0.0)
    return h2 @ w3 + b3


if __name__ == "__main__":
    n_states, n_actions = 4, 2
    key = jax.random.PRNGKey(0)
    key, kx = jax.random.split(key)
    params = init_params(key, n_states, n_actions)
    padded = pad_params(params)

    # bf16 weight matmuls (f32 accumulate) -> compare to the f32 reference with a
    # tolerance loose enough for bf16 rounding (observed error ~1e-3).
    ATOL = RTOL = 2e-2

    # Small-batch (single grid step) path — matches the DQN module's typical call.
    x = jax.random.normal(kx, (8, n_states), jnp.float32)
    out = jax.block_until_ready(net_forward(x, padded, n_actions))
    ref = reference_forward(x, params)
    assert out.shape == (8, n_actions)
    assert jnp.allclose(out, ref, atol=ATOL, rtol=RTOL), "small-batch mismatch vs reference"

    # Larger batch (non-multiple of 8) — exercises row padding + the 2-step
    # parallel grid and the narrow tiled output stores.
    key, kb = jax.random.split(key)
    xb = jax.random.normal(kb, (300, n_states), jnp.float32)
    outb = jax.block_until_ready(net_forward(xb, padded, n_actions))
    refb = reference_forward(xb, params)
    assert outb.shape == (300, n_actions)
    assert jnp.allclose(outb, refb, atol=ATOL, rtol=RTOL), "large-batch mismatch vs reference"

    print("KERNEL_OK")
</pallas_src>

<mosaic_0001>
module attributes {stable_mosaic.version = 11 : i64} {
  func.func @mlp_kernel(%arg0: i32, %arg1: memref<8x4xf32, #tpu.memory_space<vmem>>, %arg2: memref<4x128xf32, #tpu.memory_space<vmem>>, %arg3: memref<1x128xf32, #tpu.memory_space<vmem>>, %arg4: memref<128x128xbf16, #tpu.memory_space<vmem>>, %arg5: memref<1x128xf32, #tpu.memory_space<vmem>>, %arg6: memref<128x128xbf16, #tpu.memory_space<vmem>>, %arg7: memref<1x128xf32, #tpu.memory_space<vmem>>, %arg8: memref<8x2xf32, #tpu.memory_space<vmem>>) attributes {dimension_semantics = [#tpu.dimension_semantics<parallel>], iteration_bounds = array<i64: 1>, scalar_prefetch = 0 : i64, scratch_operands = 0 : i64, tpu.core_type = #tpu.core_type<tc>, window_params = [{transform_indices = @transform_0, window_bounds = array<i64: 8, 4>}, {pipeline_mode = #tpu.pipeline_mode<synchronous>, transform_indices = @transform_1, window_bounds = array<i64: 4, 128>}, {pipeline_mode = #tpu.pipeline_mode<synchronous>, transform_indices = @transform_2, window_bounds = array<i64: 1, 128>}, {pipeline_mode = #tpu.pipeline_mode<synchronous>, transform_indices = @transform_3, window_bounds = array<i64: 128, 128>}, {pipeline_mode = #tpu.pipeline_mode<synchronous>, transform_indices = @transform_4, window_bounds = array<i64: 1, 128>}, {pipeline_mode = #tpu.pipeline_mode<synchronous>, transform_indices = @transform_5, window_bounds = array<i64: 128, 128>}, {pipeline_mode = #tpu.pipeline_mode<synchronous>, transform_indices = @transform_6, window_bounds = array<i64: 1, 128>}, {transform_indices = @transform_7, window_bounds = array<i64: 8, 2>}]} {
    %c0 = arith.constant 0 : index
    %c0_0 = arith.constant 0 : index
    %0 = vector.load %arg1[%c0, %c0_0] : memref<8x4xf32, #tpu.memory_space<vmem>>, vector<8x4xf32>
    %1 = vector.extract_strided_slice %0 {offsets = [0, 0], sizes = [8, 1], strides = [1, 1]} : vector<8x4xf32> to vector<8x1xf32>
    %c0_1 = arith.constant 0 : index
    %c0_2 = arith.constant 0 : index
    %2 = vector.load %arg2[%c0_1, %c0_2] : memref<4x128xf32, #tpu.memory_space<vmem>>, vector<1x128xf32>
    %3 = vector.broadcast %1 : vector<8x1xf32> to vector<8x128xf32>
    %4 = vector.broadcast %2 : vector<1x128xf32> to vector<8x128xf32>
    %5 = arith.mulf %3, %4 : vector<8x128xf32>
    %6 = vector.extract_strided_slice %0 {offsets = [0, 1], sizes = [8, 1], strides = [1, 1]} : vector<8x4xf32> to vector<8x1xf32>
    %c1 = arith.constant 1 : index
    %c0_3 = arith.constant 0 : index
    %7 = vector.load %arg2[%c1, %c0_3] : memref<4x128xf32, #tpu.memory_space<vmem>>, vector<1x128xf32>
    %8 = vector.broadcast %6 : vector<8x1xf32> to vector<8x128xf32>
    %9 = vector.broadcast %7 : vector<1x128xf32> to vector<8x128xf32>
    %10 = arith.mulf %8, %9 : vector<8x128xf32>
    %11 = arith.addf %5, %10 : vector<8x128xf32>
    %12 = vector.extract_strided_slice %0 {offsets = [0, 2], sizes = [8, 1], strides = [1, 1]} : vector<8x4xf32> to vector<8x1xf32>
    %c2 = arith.constant 2 : index
    %c0_4 = arith.constant 0 : index
    %13 = vector.load %arg2[%c2, %c0_4] : memref<4x128xf32, #tpu.memory_space<vmem>>, vector<1x128xf32>
    %14 = vector.broadcast %12 : vector<8x1xf32> to vector<8x128xf32>
    %15 = vector.broadcast %13 : vector<1x128xf32> to vector<8x128xf32>
    %16 = arith.mulf %14, %15 : vector<8x128xf32>
    %17 = arith.addf %11, %16 : vector<8x128xf32>
    %18 = vector.extract_strided_slice %0 {offsets = [0, 3], sizes = [8, 1], strides = [1, 1]} : vector<8x4xf32> to vector<8x1xf32>
    %c3 = arith.constant 3 : index
    %c0_5 = arith.constant 0 : index
    %19 = vector.load %arg2[%c3, %c0_5] : memref<4x128xf32, #tpu.memory_space<vmem>>, vector<1x128xf32>
    %20 = vector.broadcast %18 : vector<8x1xf32> to vector<8x128xf32>
    %21 = vector.broadcast %19 : vector<1x128xf32> to vector<8x128xf32>
    %22 = arith.mulf %20, %21 : vector<8x128xf32>
    %23 = arith.addf %17, %22 : vector<8x128xf32>
    %c0_6 = arith.constant 0 : index
    %c0_7 = arith.constant 0 : index
    %24 = vector.load %arg3[%c0_6, %c0_7] : memref<1x128xf32, #tpu.memory_space<vmem>>, vector<1x128xf32>
    %25 = vector.broadcast %24 : vector<1x128xf32> to vector<8x128xf32>
    %26 = arith.addf %23, %25 : vector<8x128xf32>
    %cst = arith.constant 0.000000e+00 : f32
    %27 = vector.broadcast %cst : f32 to vector<8x128xf32>
    %28 = arith.maximumf %26, %27 : vector<8x128xf32>
    %29 = arith.truncf %28 : vector<8x128xf32> to vector<8x128xbf16>
    %c0_8 = arith.constant 0 : index
    %c0_9 = arith.constant 0 : index
    %30 = vector.load %arg4[%c0_8, %c0_9] : memref<128x128xbf16, #tpu.memory_space<vmem>>, vector<128x128xbf16>
    %cst_10 = arith.constant dense<0.000000e+00> : vector<8x128xf32>
    %31 = tpu.matmul %29, %30, %cst_10 {dimension_numbers = #tpu.dot_dimension_numbers<[1], [0], [0], [1], [0, 0, 1, 1], [], []>} : vector<8x128xbf16>, vector<128x128xbf16>, vector<8x128xf32> -> vector<8x128xf32>
    %c0_11 = arith.constant 0 : index
    %c0_12 = arith.constant 0 : index
    %32 = vector.load %arg5[%c0_11, %c0_12] : memref<1x128xf32, #tpu.memory_space<vmem>>, vector<1x128xf32>
    %33 = vector.broadcast %32 : vector<1x128xf32> to vector<8x128xf32>
    %34 = arith.addf %31, %33 : vector<8x128xf32>
    %cst_13 = arith.constant 0.000000e+00 : f32
    %35 = vector.broadcast %cst_13 : f32 to vector<8x128xf32>
    %36 = arith.maximumf %34, %35 : vector<8x128xf32>
    %37 = arith.truncf %36 : vector<8x128xf32> to vector<8x128xbf16>
    %c0_14 = arith.constant 0 : index
    %c0_15 = arith.constant 0 : index
    %38 = vector.load %arg6[%c0_14, %c0_15] : memref<128x128xbf16, #tpu.memory_space<vmem>>, vector<128x128xbf16>
    %cst_16 = arith.constant dense<0.000000e+00> : vector<8x128xf32>
    %39 = tpu.matmul %37, %38, %cst_16 {dimension_numbers = #tpu.dot_dimension_numbers<[1], [0], [0], [1], [0, 0, 1, 1], [], []>} : vector<8x128xbf16>, vector<128x128xbf16>, vector<8x128xf32> -> vector<8x128xf32>
    %c0_17 = arith.constant 0 : index
    %c0_18 = arith.constant 0 : index
    %40 = vector.load %arg7[%c0_17, %c0_18] : memref<1x128xf32, #tpu.memory_space<vmem>>, vector<1x128xf32>
    %41 = vector.broadcast %40 : vector<1x128xf32> to vector<8x128xf32>
    %42 = arith.addf %39, %41 : vector<8x128xf32>
    %43 = vector.extract_strided_slice %42 {offsets = [0, 0], sizes = [8, 2], strides = [1, 1]} : vector<8x128xf32> to vector<8x2xf32>
    %c0_19 = arith.constant 0 : index
    %c0_20 = arith.constant 0 : index
    %44 = vector.load %arg8[%c0_19, %c0_20] : memref<8x2xf32, #tpu.memory_space<vmem>>, vector<8x2xf32>
    tpu.vector_store %arg8[%c0_19, %c0_20], %43 {strides = array<i32>} : memref<8x2xf32, #tpu.memory_space<vmem>>, vector<8x2xf32>,
    return
  }
  func.func @transform_0(%arg0: i32) -> (i32, i32) {
    %c0_i32 = arith.constant 0 : i32
    %c0_i32_0 = arith.constant 0 : i32
    return %arg0, %c0_i32 : i32, i32
  }
  func.func @transform_1(%arg0: i32) -> (i32, i32) {
    %c0_i32 = arith.constant 0 : i32
    %c0_i32_0 = arith.constant 0 : i32
    %c0_i32_1 = arith.constant 0 : i32
    return %c0_i32, %c0_i32_0 : i32, i32
  }
  func.func @transform_2(%arg0: i32) -> (i32, i32) {
    %c0_i32 = arith.constant 0 : i32
    %c0_i32_0 = arith.constant 0 : i32
    %c0_i32_1 = arith.constant 0 : i32
    return %c0_i32, %c0_i32_0 : i32, i32
  }
  func.func @transform_3(%arg0: i32) -> (i32, i32) {
    %c0_i32 = arith.constant 0 : i32
    %c0_i32_0 = arith.constant 0 : i32
    %c0_i32_1 = arith.constant 0 : i32
    return %c0_i32, %c0_i32_0 : i32, i32
  }
  func.func @transform_4(%arg0: i32) -> (i32, i32) {
    %c0_i32 = arith.constant 0 : i32
    %c0_i32_0 = arith.constant 0 : i32
    %c0_i32_1 = arith.constant 0 : i32
    return %c0_i32, %c0_i32_0 : i32, i32
  }
  func.func @transform_5(%arg0: i32) -> (i32, i32) {
    %c0_i32 = arith.constant 0 : i32
    %c0_i32_0 = arith.constant 0 : i32
    %c0_i32_1 = arith.constant 0 : i32
    return %c0_i32, %c0_i32_0 : i32, i32
  }
  func.func @transform_6(%arg0: i32) -> (i32, i32) {
    %c0_i32 = arith.constant 0 : i32
    %c0_i32_0 = arith.constant 0 : i32
    %c0_i32_1 = arith.constant 0 : i32
    return %c0_i32, %c0_i32_0 : i32, i32
  }
  func.func @transform_7(%arg0: i32) -> (i32, i32) {
    %c0_i32 = arith.constant 0 : i32
    %c0_i32_0 = arith.constant 0 : i32
    return %arg0, %c0_i32 : i32, i32
  }
}

</mosaic_0001>

<bundles_post_ra>
// kernel: tpu_custom_call.1
= control target key start
LH: loop header
LB: loop body
LE: loop exit
PB: predicated region body
PF: predicated region fallthrough
CT: control target
= control target key end

     0   :  { %12 = vsyncpa [#allocation3], 0  ;;  %s599_s0 = inlined_call_operand.vmem [shape: f32[8,4], index: 0, kind: input, shape index: {}]   ;;  %s600_s1 = inlined_call_operand.vmem [shape: f32[4,128], index: 1, kind: input, shape index: {}]   ;;  %s601_s2 = inlined_call_operand.vmem [shape: f32[1,128], index: 2, kind: input, shape index: {}]   ;;  %s602_s3 = inlined_call_operand.hbm [shape: bf16[128,128], index: 3, kind: input, shape index: {}]   ;;  %s603_s4 = inlined_call_operand.vmem [shape: f32[1,128], index: 4, kind: input, shape index: {}]   ;;  %s604_s5 = inlined_call_operand.hbm [shape: bf16[128,128], index: 5, kind: input, shape index: {}]   ;;  %s605_s6 = inlined_call_operand.vmem [shape: f32[1,128], index: 6, kind: input, shape index: {}]   ;;  %s606_s7 = inlined_call_operand.vmem [shape: f32[8,2], index: 7, kind: output, shape index: {}]  }
   0x1   :  { %13 = vsyncpa [#allocation5], 0  ;;  %s498_s24 = smov [#allocation2]  }
   0x2   :  { %s25_s25 = sshll.u32 %s498_s24, 4  ;;  %s26_s25 = int_to_ptr.vmem [resolvable:$true] %s25_s25 }
   0x3   :  { %s462_s26 = scalar_lea.vmem %s26_s25, 1024  ;;  %p467_p1 = scmp.lt.s32.totalorder %s26_s25, %s26_s25 }
   0x4   :  { %p463_p0 = scmp.ne.s32.totalorder %s26_s25, %s462_s26  ;;  %p468_p2 = scmp.lt.s32.totalorder %s462_s26, %s462_s26 }
   0x6   :  { %p469_p3 = por %p468_p2, %p467_p1 }
   0x8   :  { %p470_p4 = pnand %p469_p3, %p463_p0 }
   0xa   :  { %473 = shalt.err (!%p470_p4)
}
   0xb   :  { %s499_s27 = smov 64   ;;  %s500_s28 = smov 4  }
   0xc   :  { %31 = dma.hbm_to_vmem [thread:$0]  %s602_s3, 1024, %s26_s25, [#allocation3], %s499_s27, %s499_s27, %s500_s28  }
   0xd   :  { %s501_s8 = smov [#allocation4]  }
   0xe   :  { %s39_s9 = sshll.u32 %s501_s8, 4  ;;  %s40_s9 = int_to_ptr.vmem [resolvable:$true] %s39_s9 }
   0xf   :  { %s482_s10 = scalar_lea.vmem %s40_s9, 1024  ;;  %p487_p6 = scmp.lt.s32.totalorder %s40_s9, %s40_s9 }
  0x10   :  { %p483_p5 = scmp.ne.s32.totalorder %s40_s9, %s482_s10  ;;  %p488_p7 = scmp.lt.s32.totalorder %s482_s10, %s482_s10 }
  0x12   :  { %p489_p8 = por %p488_p7, %p487_p6 }
  0x14   :  { %p490_p9 = pnand %p489_p8, %p483_p5 }
  0x16   :  { %493 = shalt.err (!%p490_p9)
}
  0x17   :  { %45 = dma.hbm_to_vmem [thread:$0]  %s604_s5, 1024, %s40_s9, [#allocation5], %s499_s27, %s499_s27, %s500_s28  }
  0x18   :  { %494 = dma.done.wait [#allocation3], 1024  }
  0x19   :  { %495 = vsyncadd [#allocation3], 4294966272 }
  0x1a   :  { %496 = dma.done.wait [#allocation5], 1024  }
  0x1b   :  { %497 = vsyncadd [#allocation5], 4294966272  ;;  %v502_v0 = vmov 0   ;;  %v503_v1 = vmov 2   ;;  %v504_v2 = vmov 0.0   ;;  %v55_v3 = vld [vmem:[%s599_s0] sm:$0xff] }
  0x1c   :  { %433 = vset.pattern.permute.xlu0 %v502_v0  ;;  %435 = vset.pattern.permute.xlu1 %v503_v1  ;;  %v438_v4 = vld [vmem:[#allocation2 + $0x38] sm:$0xff]   ;;  %v439_v5 = vld [vmem:[#allocation2 + $0x30] sm:$0xff]   ;;  %v505_v6 = vmov 1   ;;  %v506_v7 = vmov 3   ;;  %v440_v8 = vld [vmem:[#allocation2 + $0x28] sm:$0xff]   ;;  %vm507_vm0 = vmmov 0  }
  0x1d   :  { %383 = vmatprep.subr.bf16.mxu0 %v504_v2  ;;  %403 = vmatprep.subr.bf16.mxu1 %v504_v2  ;;  %v441_v9 = vld [vmem:[#allocation2 + $0x20] sm:$0xff]   ;;  %v442_v10 = vld [vmem:[#allocation2 + $0x18] sm:$0xff]   ;;  %v447_v12 = vld [vmem:[#allocation4 + $0x30] sm:$0xff]   ;;  %vm334_vm1 = vcmask 15360  }
  0x1e   :  { %59 = vperm.xlu0 %433, %v55_v3   ;;  %80 = vperm.xlu1 %435, %v55_v3   ;;  %v446_v11 = vld [vmem:[#allocation4 + $0x38] sm:$0xff]   ;;  %v443_v13 = vld [vmem:[#allocation2 + $0x10] sm:$0xff]   ;;  %v448_v14 = vld [vmem:[#allocation4 + $0x28] sm:$0xff]  }
  0x1f   :  { %384 = vmatpush3.bf16.msra.mxu0 %v438_v4  ;;  %399 = vmatprep.mubr.msk.bf16.mxu0 %vm507_vm0, %v504_v2  ;;  %v444_v15 = vld [vmem:[#allocation2 + $0x8] sm:$0xff]   ;;  %v449_v16 = vld [vmem:[#allocation4 + $0x20] sm:$0xff]   ;;  %v450_v18 = vld [vmem:[#allocation4 + $0x18] sm:$0xff]  }
  0x20   :  { %385 = vmatprep.subr.bf16.mxu0 %v504_v2  ;;  %419 = vmatprep.mubr.msk.bf16.mxu1 %vm507_vm0, %v504_v2  ;;  %v445_v17 = vld [vmem:[#allocation2] sm:$0xff]   ;;  %v451_v19 = vld [vmem:[#allocation4 + $0x10] sm:$0xff]   ;;  %v452_v39 = vld [vmem:[#allocation4 + $0x8] sm:$0xff]  }
  0x21   :  { %404 = vmatpush3.bf16.msra.mxu1 %v446_v11  ;;  %v342_v22 = vld [vmem:[%s600_s1] ss:$0 sm:$0xff]  ;;  %v343_v23 = vld [vmem:[%s600_s1 + $0x1] ss:$0 sm:$0xff]  ;;  %v344_v24 = vld [vmem:[%s600_s1 + $0x2] ss:$0 sm:$0xff] }
  0x22   :  { %434 = vset.pattern.permute.xlu0 %v505_v6  ;;  %436 = vset.pattern.permute.xlu1 %v506_v7  ;;  %v345_v26 = vld [vmem:[%s600_s1 + $0x3] ss:$0 sm:$0xff]  ;;  %v346_v34 = vld [vmem:[%s601_s2] ss:$0 sm:$0xff] }
  0x23   :  { %69 = vperm.xlu0 %434, %v55_v3   ;;  %91 = vperm.xlu1 %436, %v55_v3   ;;  %v453_v40 = vld [vmem:[#allocation4] sm:$0xff]  }
  0x24   :  { %386 = vmatpush3.bf16.msra.mxu0 %v439_v5  ;;  %405 = vmatprep.subr.bf16.mxu1 %v504_v2  ;;  %v347_v41 = vld [vmem:[%s603_s4] ss:$0 sm:$0xff] }
  0x25   :  { %387 = vmatprep.subr.bf16.mxu0 %v504_v2  ;;  %406 = vmatpush3.bf16.msra.mxu1 %v447_v12  ;;  %v356_v49 = vld [vmem:[%s605_s6] ss:$0 sm:$0xff] }
  0x26   :  { %407 = vmatprep.subr.bf16.mxu1 %v504_v2 }
  0x27   :  { %437 = vset.pattern.permute.xlu0 %v506_v7 }
  0x28   :  { %388 = vmatpush3.bf16.msra.mxu0 %v440_v8 }
  0x29   :  { %389 = vmatprep.subr.bf16.mxu0 %v504_v2  ;;  %408 = vmatpush3.bf16.msra.mxu1 %v448_v14 }
  0x2a   :  { %409 = vmatprep.subr.bf16.mxu1 %v504_v2 }
  0x2c   :  { %390 = vmatpush3.bf16.msra.mxu0 %v441_v9 }
  0x2d   :  { %391 = vmatprep.subr.bf16.mxu0 %v504_v2  ;;  %410 = vmatpush3.bf16.msra.mxu1 %v449_v16 }
  0x2e   :  { %411 = vmatprep.subr.bf16.mxu1 %v504_v2 }
  0x30   :  { %392 = vmatpush3.bf16.msra.mxu0 %v442_v10 }
  0x31   :  { %393 = vmatprep.subr.bf16.mxu0 %v504_v2  ;;  %412 = vmatpush3.bf16.msra.mxu1 %v450_v18 }
  0x32   :  { %413 = vmatprep.subr.bf16.mxu1 %v504_v2 }
  0x34   :  { %394 = vmatpush3.bf16.msra.mxu0 %v443_v13 }
  0x35   :  { %395 = vmatprep.subr.bf16.mxu0 %v504_v2  ;;  %414 = vmatpush3.bf16.msra.mxu1 %v451_v19 }
  0x36   :  { %415 = vmatprep.subr.bf16.mxu1 %v504_v2 }
  0x38   :  { %396 = vmatpush3.bf16.msra.mxu0 %v444_v15 }
  0x39   :  { %397 = vmatprep.subr.bf16.mxu0 %v504_v2  ;;  %416 = vmatpush3.bf16.msra.mxu1 %v452_v39 }
  0x3a   :  { %417 = vmatprep.subr.bf16.mxu1 %v504_v2 }
  0x3c   :  { %398 = vmatpush3.bf16.msra.mxu0 %v445_v17 }
  0x3d   :  { %418 = vmatpush3.bf16.msra.mxu1 %v453_v40 }
  0x99   :  { %v60_v20 = vpop.permute.xlu0 %59  ;;  %v81_v21 = vpop.permute.xlu1 %80 }
  0x9a   :  { %v66_v28 = vmul.f32 %v342_v22, %v60_v20  ;;  %v87_v30 = vmul.f32 %v344_v24, %v81_v21 }
  0x9e   :  { %v70_v25 = vpop.permute.xlu0 %69  ;;  %v92_v27 = vpop.permute.xlu1 %91 }
  0x9f   :  { %v76_v29 = vmul.f32 %v343_v23, %v70_v25  ;;  %v98_v32 = vmul.f32 %v345_v26, %v92_v27 }
  0xa1   :  { %v77_v31 = vadd.f32 %v76_v29, %v66_v28 }
  0xa3   :  { %v88_v33 = vadd.f32 %v87_v30, %v77_v31 }
  0xa5   :  { %v99_v35 = vadd.f32 %v98_v32, %v88_v33 }
  0xa7   :  { %v107_v36 = vadd.f32 %v346_v34, %v99_v35 }
  0xa9   :  { %v108_v37 = vmax.f32 %v107_v36, 0.0 }
  0xab   :  { %v109_v38 = vpack.c.bf16 %v108_v37, %v108_v37 }
  0xad   :  { %400 = vmatmul.mubr.bf16.vlgmr.msra.gmra.mxu0 %v109_v38 }
 0x16d   :  { %v215_v42 = vpop.f32.mrf.mxu0 }
 0x16e   :  { %v216_v43 = vadd.f32 %v347_v41, %v215_v42 }
 0x16f   :  { %v401_v44 = vpop.f32.mrf.mxu0 }
 0x170   :  { %v221_v45 = vmax.f32 %v216_v43, 0.0 }
 0x171   :  { %v218_v46 = vpop.f32.mrf.mxu0 }
 0x172   :  { %v222_v47 = vpack.c.bf16 %v221_v45, %v221_v45 }
 0x173   :  { %v402_v48 = vpop.f32.mrf.mxu0 }
 0x174   :  { %420 = vmatmul.mubr.bf16.vlgmr.msra.gmra.mxu1 %v222_v47 }
 0x234   :  { %v328_v50 = vpop.f32.mrf.mxu1 }
 0x235   :  { %v329_v51 = vadd.f32 %v356_v49, %v328_v50 }
 0x236   :  { %v421_v52 = vpop.f32.mrf.mxu1 }
 0x237   :  { %335 = vst.msk [vmem:[%s606_s7] sm:$0xff] %vm334_vm1, %v329_v51 }
 0x238   :  { %v331_v53 = vpop.f32.mrf.mxu1 }
 0x23a   :  { %v422_v54 = vpop.f32.mrf.mxu1 }
 0x23b   :  { %340 = vsyncpa [#allocation3], 1 }
 0x23c   :  { %341 = vsyncpa [#allocation5], 1 }

</bundles_post_ra>
